<compile_context>
chip_gen: v5e
topology: v5e:2x2
jax: 0.10.0
libtpu: 0.0.40
codegen_flags: <defaults>
</compile_context>

<pallas_src>
import functools

import jax
import jax.numpy as jnp
from jax.experimental import pallas as pl
from jax.experimental.pallas import tpu as pltpu


# --------------------------------------------------------------------------
# Kernels
# --------------------------------------------------------------------------
def _fused_bn_kernel(x_ref, gamma_ref, beta_ref, o_ref, *, count, eps):
    """Channels-on-lanes fused BN.

    x_ref: (rows, c_tile) with rows = N*H*W on the sublane axis and channels
    on the lane axis. Computes batch stats (reduce over sublanes), finalizes
    scale/shift as (1, c_tile) lane vectors, and writes the normalized output
    — all in one grid step per channel tile.
    """
    x = x_ref[...].astype(jnp.float32)                       # (rows, c_tile)
    inv_cnt = jnp.float32(1.0 / count)
    mean = jnp.sum(x, axis=0, keepdims=True) * inv_cnt       # (1, c_tile)
    ex2 = jnp.sum(x * x, axis=0, keepdims=True) * inv_cnt
    # biased variance (PyTorch normalizes with biased var); clamp at 0 to
    # guard against f32 cancellation in E[x^2] - mean^2.
    var = jnp.maximum(ex2 - mean * mean, jnp.float32(0.0))
    inv_std = jax.lax.rsqrt(var + jnp.float32(eps))
    scale = gamma_ref[...].astype(jnp.float32) * inv_std     # (1, c_tile)
    shift = beta_ref[...].astype(jnp.float32) - mean * scale
    o_ref[...] = (x * scale + shift).astype(o_ref.dtype)


def _stats_kernel(x_ref, gamma_ref, beta_ref, scale_ref, shift_ref,
                  sum_ref, sumsq_ref, *, count, eps):
    """Fallback pass 1 (NCHW-native): accumulate per-channel sum / sumsq over
    N (grid axis 1) and H*W (lanes); finalize scale = gamma * rsqrt(var+eps),
    shift = beta - mean * scale."""
    n_idx = pl.program_id(1)

    @pl.when(n_idx == 0)
    def _():
        sum_ref[...] = jnp.zeros_like(sum_ref)
        sumsq_ref[...] = jnp.zeros_like(sumsq_ref)

    x = x_ref[0].astype(jnp.float32)                          # (c_tile, HW)
    sum_ref[...] += jnp.sum(x, axis=1, keepdims=True)         # (c_tile, 1)
    sumsq_ref[...] += jnp.sum(x * x, axis=1, keepdims=True)

    @pl.when(n_idx == pl.num_programs(1) - 1)
    def _():
        inv_cnt = jnp.float32(1.0 / count)
        mean = sum_ref[...] * inv_cnt
        var = jnp.maximum(sumsq_ref[...] * inv_cnt - mean * mean,
                          jnp.float32(0.0))
        inv_std = jax.lax.rsqrt(var + jnp.float32(eps))
        scale = gamma_ref[...].astype(jnp.float32) * inv_std
        scale_ref[...] = scale
        shift_ref[...] = beta_ref[...].astype(jnp.float32) - mean * scale


def _norm_kernel(x_ref, scale_ref, shift_ref, o_ref):
    """Fallback pass 2 (NCHW-native): y = x * scale + shift, scale/shift are
    (c_tile, 1) broadcast over lanes."""
    x = x_ref[0].astype(jnp.float32)                          # (c_tile, HW)
    o_ref[0] = (x * scale_ref[...] + shift_ref[...]).astype(o_ref.dtype)


# --------------------------------------------------------------------------
# Tile / budget helpers
# --------------------------------------------------------------------------
def _vmem_capacity_bytes():
    """Physical VMEM per core; conservative 64 MiB (v7x) if unknown."""
    try:
        info = pltpu.get_tpu_info()
        cap = getattr(info, "vmem_capacity_bytes", None)
        if cap:
            return int(cap)
    except Exception:
        pass
    return 64 * 1024 * 1024


def _scoped_vmem_limit():
    """Scoped VMEM limit: 3/4 of physical, capped at 96 MiB.
    -> 48 MiB on v7x (64 MiB phys), 96 MiB on v5e/v6e (128 MiB phys)."""
    return min(_vmem_capacity_bytes() * 3 // 4, 96 * 1024 * 1024)


def _sublane_multiple(dtype):
    itemsize = jnp.dtype(dtype).itemsize
    if itemsize >= 4:
        return 8
    if itemsize == 2:
        return 16
    return 32


def _pick_lane_ctile(c, rows, itemsize, budget_bytes):
    """Lane-dense channel tile for the fused path, or None if nothing fits.

    Per-block footprint ~= 2x in + 2x out double buffers (native dtype) plus
    ~4 f32 working tiles. Prefers >=2 c-blocks (v7x megacore) among fitting
    candidates; otherwise the largest fitting tile."""
    cands = [d for d in range(128, c + 1, 128) if c % d == 0]
    if not cands:
        cands = [c]  # full last dim is always a legal block

    def per_block(ct):
        return (4 * itemsize + 4 * 4) * rows * ct

    fitting = [ct for ct in cands if per_block(ct) <= budget_bytes]
    if not fitting:
        return None
    multi = [ct for ct in fitting if c // ct >= 2]
    return max(multi) if multi else max(fitting)


def _pick_c_tile(c, hw, itemsize, sub, budget_bytes):
    """Fallback (NCHW) channel tile: largest multiple-of-`sub` divisor of C
    whose (c_tile, HW) block fits `budget_bytes`, preferring >=2 c-blocks."""
    divisors = [d for d in range(sub, c + 1, sub) if c % d == 0]
    if not divisors:
        return c
    fitting = [d for d in divisors if d * hw * itemsize <= budget_bytes]
    if not fitting:
        return min(divisors)
    multi = [d for d in fitting if c // d >= 2]
    return max(multi) if multi else max(fitting)


# --------------------------------------------------------------------------
# Wrapper
# --------------------------------------------------------------------------
def batchnorm2d_pallas(x_nchw, gamma, beta, *, eps=1e-3):
    """Training-mode BatchNorm2d forward. x_nchw: (N, C, H, W) -> (N, C, H, W)."""
    n, c, h, w = x_nchw.shape
    hw = h * w
    rows = n * hw
    dtype = x_nchw.dtype
    itemsize = jnp.dtype(dtype).itemsize
    limit = _scoped_vmem_limit()

    # ------------- fused single-pass path (channels on lanes) -------------
    c_tile_f = _pick_lane_ctile(c, rows, itemsize, budget_bytes=limit // 2)
    if c_tile_f is not None:
        # (N,C,H,W) -> (N,H,W,C) -> (N*H*W, C): channels land on lanes
        # (C=384 = 3*128 is exactly lane-dense for the spec shape).
        x2 = jnp.transpose(x_nchw, (0, 2, 3, 1)).reshape(rows, c)
        gamma2 = gamma.reshape(1, c).astype(jnp.float32)
        beta2 = beta.reshape(1, c).astype(jnp.float32)

        out2 = pl.pallas_call(
            functools.partial(_fused_bn_kernel, count=rows, eps=eps),
            out_shape=jax.ShapeDtypeStruct((rows, c), dtype),
            grid_spec=pltpu.PrefetchScalarGridSpec(
                num_scalar_prefetch=0,
                grid=(c // c_tile_f,),
                in_specs=[
                    pl.BlockSpec((rows, c_tile_f), lambda ci: (0, ci)),
                    pl.BlockSpec((1, c_tile_f), lambda ci: (0, ci)),
                    pl.BlockSpec((1, c_tile_f), lambda ci: (0, ci)),
                ],
                out_specs=pl.BlockSpec((rows, c_tile_f), lambda ci: (0, ci)),
            ),
            compiler_params=pltpu.CompilerParams(
                dimension_semantics=("parallel",),
                vmem_limit_bytes=limit,
            ),
        )(x2, gamma2, beta2)

        return jnp.transpose(out2.reshape(n, h, w, c), (0, 3, 1, 2))

    # ------------- fallback: two-pass NCHW-native path ---------------------
    # (only taken when the per-c-tile (N*H*W, c_tile) slab is too big for
    #  VMEM; avoids a full-size NHWC transpose of a large tensor.)
    x3 = x_nchw.reshape(n, c, hw)            # free view of contiguous NCHW
    gamma1 = gamma.reshape(c, 1).astype(jnp.float32)
    beta1 = beta.reshape(c, 1).astype(jnp.float32)
    sub = _sublane_multiple(dtype)

    # Pass-aware block budgets: pass 1 only double-buffers the input block;
    # pass 2 double-buffers input and output blocks.
    c_tile1 = _pick_c_tile(c, hw, itemsize, sub, budget_bytes=limit // 3)
    c_tile2 = _pick_c_tile(c, hw, itemsize, sub, budget_bytes=limit // 5)
    nblk1 = c // c_tile1 if c % c_tile1 == 0 else 1
    if c % c_tile1 != 0:
        c_tile1 = c
    nblk2 = c // c_tile2 if c % c_tile2 == 0 else 1
    if c % c_tile2 != 0:
        c_tile2 = c

    # ---- pass 1: per-channel batch statistics -> scale / shift ----
    scale, shift = pl.pallas_call(
        functools.partial(_stats_kernel, count=n * hw, eps=eps),
        out_shape=(
            jax.ShapeDtypeStruct((c, 1), jnp.float32),
            jax.ShapeDtypeStruct((c, 1), jnp.float32),
        ),
        grid_spec=pltpu.PrefetchScalarGridSpec(
            num_scalar_prefetch=0,
            grid=(nblk1, n),
            in_specs=[
                pl.BlockSpec((1, c_tile1, hw), lambda ci, ni: (ni, ci, 0)),
                pl.BlockSpec((c_tile1, 1), lambda ci, ni: (ci, 0)),
                pl.BlockSpec((c_tile1, 1), lambda ci, ni: (ci, 0)),
            ],
            out_specs=(
                pl.BlockSpec((c_tile1, 1), lambda ci, ni: (ci, 0)),
                pl.BlockSpec((c_tile1, 1), lambda ci, ni: (ci, 0)),
            ),
            scratch_shapes=[
                pltpu.VMEM((c_tile1, 1), jnp.float32),
                pltpu.VMEM((c_tile1, 1), jnp.float32),
            ],
        ),
        compiler_params=pltpu.CompilerParams(
            dimension_semantics=("parallel", "arbitrary"),
            vmem_limit_bytes=limit,
        ),
    )(x3, gamma1, beta1)

    # ---- pass 2: normalize (pure FMA, fully parallel grid) ----
    out3 = pl.pallas_call(
        _norm_kernel,
        out_shape=jax.ShapeDtypeStruct((n, c, hw), dtype),
        grid_spec=pltpu.PrefetchScalarGridSpec(
            num_scalar_prefetch=0,
            grid=(nblk2, n),
            in_specs=[
                pl.BlockSpec((1, c_tile2, hw), lambda ci, ni: (ni, ci, 0)),
                pl.BlockSpec((c_tile2, 1), lambda ci, ni: (ci, 0)),
                pl.BlockSpec((c_tile2, 1), lambda ci, ni: (ci, 0)),
            ],
            out_specs=pl.BlockSpec((1, c_tile2, hw), lambda ci, ni: (ni, ci, 0)),
        ),
        compiler_params=pltpu.CompilerParams(
            dimension_semantics=("parallel", "parallel"),
            vmem_limit_bytes=limit,
        ),
    )(x3, scale, shift)

    return out3.reshape(n, c, h, w)


# --------------------------------------------------------------------------
# Self-test
# --------------------------------------------------------------------------
if __name__ == "__main__":
    key = jax.random.PRNGKey(0)
    kx, kg, kb = jax.random.split(key, 3)

    # Shapes from the module spec: x776 = randn([1, 384, 7, 7]), BatchNorm2d(384).
    N, C, H, W = 1, 384, 7, 7
    x = jax.random.normal(kx, (N, C, H, W), dtype=jnp.float32)
    # PyTorch default init is gamma=1, beta=0; use random values to exercise
    # the affine path deterministically.
    gamma = 1.0 + 0.1 * jax.random.normal(kg, (C,), dtype=jnp.float32)
    beta = 0.1 * jax.random.normal(kb, (C,), dtype=jnp.float32)

    out = batchnorm2d_pallas(x, gamma, beta, eps=1e-3)
    out = jax.block_until_ready(out)

    # Pure-JAX reference of training-mode BatchNorm2d (batch stats, biased var).
    mean = jnp.mean(x, axis=(0, 2, 3), keepdims=True)
    var = jnp.mean((x - mean) ** 2, axis=(0, 2, 3), keepdims=True)
    ref = (x - mean) / jnp.sqrt(var + 1e-3) * gamma.reshape(1, C, 1, 1) \
        + beta.reshape(1, C, 1, 1)

    assert out.shape == (N, C, H, W)
    max_err = float(jnp.max(jnp.abs(out - ref)))
    assert jnp.allclose(out, ref, atol=1e-4, rtol=1e-4), max_err

    print("KERNEL_OK")
</pallas_src>

<mosaic_0001>
module attributes {stable_mosaic.version = 11 : i64} {
  func.func @_fused_bn_kernel(%arg0: i32, %arg1: memref<49x128xf32, #tpu.memory_space<vmem>>, %arg2: memref<1x128xf32, #tpu.memory_space<vmem>>, %arg3: memref<1x128xf32, #tpu.memory_space<vmem>>, %arg4: memref<49x128xf32, #tpu.memory_space<vmem>>) attributes {dimension_semantics = [#tpu.dimension_semantics<parallel>], iteration_bounds = array<i64: 3>, scalar_prefetch = 0 : i64, scratch_operands = 0 : i64, tpu.core_type = #tpu.core_type<tc>, window_params = [{transform_indices = @transform_0, window_bounds = array<i64: 49, 128>}, {transform_indices = @transform_1, window_bounds = array<i64: 1, 128>}, {transform_indices = @transform_2, window_bounds = array<i64: 1, 128>}, {transform_indices = @transform_3, window_bounds = array<i64: 49, 128>}]} {
    %c0 = arith.constant 0 : index
    %c0_0 = arith.constant 0 : index
    %0 = vector.load %arg1[%c0, %c0_0] : memref<49x128xf32, #tpu.memory_space<vmem>>, vector<49x128xf32>
    %cst = arith.constant dense<0.000000e+00> : vector<128xf32>
    %1 = vector.multi_reduction <add>, %0, %cst [0] : vector<49x128xf32> to vector<128xf32>
    %2 = vector.shape_cast %1 : vector<128xf32> to vector<1x128xf32>
    %cst_1 = arith.constant 0.0204081628 : f32
    %3 = vector.broadcast %cst_1 : f32 to vector<1x128xf32>
    %4 = arith.mulf %2, %3 : vector<1x128xf32>
    %5 = arith.mulf %0, %0 : vector<49x128xf32>
    %cst_2 = arith.constant dense<0.000000e+00> : vector<128xf32>
    %6 = vector.multi_reduction <add>, %5, %cst_2 [0] : vector<49x128xf32> to vector<128xf32>
    %7 = vector.shape_cast %6 : vector<128xf32> to vector<1x128xf32>
    %cst_3 = arith.constant 0.0204081628 : f32
    %8 = vector.broadcast %cst_3 : f32 to vector<1x128xf32>
    %9 = arith.mulf %7, %8 : vector<1x128xf32>
    %10 = arith.mulf %4, %4 : vector<1x128xf32>
    %11 = arith.subf %9, %10 : vector<1x128xf32>
    %cst_4 = arith.constant 0.000000e+00 : f32
    %12 = vector.broadcast %cst_4 : f32 to vector<1x128xf32>
    %13 = arith.maximumf %11, %12 : vector<1x128xf32>
    %cst_5 = arith.constant 1.000000e-03 : f32
    %14 = vector.broadcast %cst_5 : f32 to vector<1x128xf32>
    %15 = arith.addf %13, %14 : vector<1x128xf32>
    %16 = math.rsqrt %15 : vector<1x128xf32>
    %c0_6 = arith.constant 0 : index
    %c0_7 = arith.constant 0 : index
    %17 = vector.load %arg2[%c0_6, %c0_7] : memref<1x128xf32, #tpu.memory_space<vmem>>, vector<1x128xf32>
    %18 = arith.mulf %17, %16 : vector<1x128xf32>
    %c0_8 = arith.constant 0 : index
    %c0_9 = arith.constant 0 : index
    %19 = vector.load %arg3[%c0_8, %c0_9] : memref<1x128xf32, #tpu.memory_space<vmem>>, vector<1x128xf32>
    %20 = arith.mulf %4, %18 : vector<1x128xf32>
    %21 = arith.subf %19, %20 : vector<1x128xf32>
    %22 = vector.broadcast %18 : vector<1x128xf32> to vector<49x128xf32>
    %23 = arith.mulf %0, %22 : vector<49x128xf32>
    %24 = vector.broadcast %21 : vector<1x128xf32> to vector<49x128xf32>
    %25 = arith.addf %23, %24 : vector<49x128xf32>
    %c0_10 = arith.constant 0 : index
    %c0_11 = arith.constant 0 : index
    %26 = vector.load %arg4[%c0_10, %c0_11] : memref<49x128xf32, #tpu.memory_space<vmem>>, vector<49x128xf32>
    tpu.vector_store %arg4[%c0_10, %c0_11], %25 {strides = array<i32>} : memref<49x128xf32, #tpu.memory_space<vmem>>, vector<49x128xf32>,
    return
  }
  func.func @transform_0(%arg0: i32) -> (i32, i32) {
    %c0_i32 = arith.constant 0 : i32
    %c0_i32_0 = arith.constant 0 : i32
    return %c0_i32, %arg0 : i32, i32
  }
  func.func @transform_1(%arg0: i32) -> (i32, i32) {
    %c0_i32 = arith.constant 0 : i32
    %c0_i32_0 = arith.constant 0 : i32
    return %c0_i32, %arg0 : i32, i32
  }
  func.func @transform_2(%arg0: i32) -> (i32, i32) {
    %c0_i32 = arith.constant 0 : i32
    %c0_i32_0 = arith.constant 0 : i32
    return %c0_i32, %arg0 : i32, i32
  }
  func.func @transform_3(%arg0: i32) -> (i32, i32) {
    %c0_i32 = arith.constant 0 : i32
    %c0_i32_0 = arith.constant 0 : i32
    return %c0_i32, %arg0 : i32, i32
  }
}

</mosaic_0001>

<bundles_post_ra>
// kernel: tpu_custom_call.1
= control target key start
LH: loop header
LB: loop body
LE: loop exit
PB: predicated region body
PF: predicated region fallthrough
CT: control target
= control target key end

     0   :  { %s945_s0 = inlined_call_operand.hbm [shape: f32[49,384], index: 0, kind: input, shape index: {}]   ;;  %s946_s1 = inlined_call_operand.hbm [shape: f32[1,384], index: 1, kind: input, shape index: {}]   ;;  %s947_s2 = inlined_call_operand.hbm [shape: f32[1,384], index: 2, kind: input, shape index: {}]   ;;  %s948_s3 = inlined_call_operand.hbm [shape: f32[49,384], index: 3, kind: output, shape index: {}]  }
   0x1   :  { %949 = sst [smem:[#allocation13_spill]] %s945_s0 }
   0x2   :  { %950 = sst [smem:[#allocation14_spill]] %s946_s1 }
   0x3   :  { %8 = vsyncpa [#allocation3], 0 }
   0x4   :  { %10 = vsyncpa [#allocation3 + $0x1], 0 }
   0x5   :  { %11 = vsyncpa [#allocation6], 0 }
   0x6   :  { %13 = vsyncpa [#allocation6 + $0x1], 0 }
   0x7   :  { %14 = vsyncpa [#allocation4], 0 }
   0x8   :  { %16 = vsyncpa [#allocation4 + $0x1], 0  ;;  %s731_s12 = smov 0   ;;  %s733_s13 = smov 0  }
   0x9   :  { %s735_s14 = smov 0   ;;  %s737_s15 = smov 0  }
   0xa LB: > { %s752_s16 = sadd.s32 4294967295, %s703_s15   ;;  %s469_s17 = sadd.s32 4294967294, %s703_s15   ;;  %s703_s15 = sphi %s737_s15, %s963_s15   ;;  %s699_s14 = sphi %s735_s14, %s962_s14   ;;  %s695_s13 = sphi %s733_s13, %s961_s13   ;;  %s691_s12 = sphi %s731_s12, %s960_s12  }
   0xb   : > { %s756_s18 = sadd.s32 1, %s703_s15   ;;  %s29_s19 = sadd.s32 1, %s699_s14 }
   0xc   : > { %s26_s20 = ssub.s32 %s703_s15, %s756_s18  ;;  %p36_p0 = scmp.ne.s32.totalorder %s699_s14, %s695_s13 }
   0xd   : > { %p27_p1 = scmp.eq.s32.totalorder %s26_s20, 0  ;;  %p37_p2 = scmp.eq.s32.totalorder %s703_s15, 0 }
   0xe   : > { %p42_p3 = scmp.ne.s32.totalorder %s695_s13, %s691_s12  ;;  %p43_p4 = scmp.eq.s32.totalorder %s752_s16, 0 }
   0xf   : > { %s768_s21 = scalar_select %p27_p1, %s699_s14, %s29_s19  }
  0x10   : > { %p38_p5 = por %p37_p2, %p36_p0  ;;  %p770_p6 = por %p43_p4, %p42_p3 }
  0x11   : > { %951 = sst [smem:[#allocation12_spill]] %s768_s21  ;;  %p118_p7 = scmp.eq.s32.totalorder %s752_s16, 2 }
  0x12   : > { %p124_p8 = scmp.eq.s32.totalorder %s469_s17, 2  ;;  %p501_p9 = scmp.lt.s32.totalorder %s703_s15, 3 }
  0x13   : > { %p776_p10 = por %p118_p7, %p36_p0  ;;  %s785_s25 = sand.u32 1, %s699_s14  }
  0x14   : > { %p780_p11 = por %p124_p8, %p42_p3  ;;  %p787_p12 = pnand %p501_p9, %p38_p5 }
  0x15   : > { %s477_s27 = smul.u32 56, %s785_s25  ;;  %s165_s28 = sand.u32 1, %s703_s15  }
  0x16   : > { %s956_s1 = sld [smem:[#allocation14_spill]]  ;;  %s168_s6 = scalar_lea.vmem [#allocation5], %s785_s25 }
  0x17   : > { %s175_s7 = sshll.u32 %s168_s6, 4  ;;  %s798_s8 = scalar_lea.sflag [#allocation6], %s165_s28  ;;  %s176_s7 = int_to_ptr.vmem [resolvable:$true] %s175_s7 }
  0x18   : > { %p547_p0 = pneg %p787_p12 }
  0x1c   : > { %s171_s4 = scalar_lea.hbm %s956_s1, %s703_s15  ;;  %s550_s19 = scalar_lea.hbm %s956_s1, 3 }
  0x1d   : > { %s173_s5 = sshll.u32 %s171_s4, 4  ;;  %s174_s5 = int_to_ptr.hbm [resolvable:$true] %s173_s5 }
  0x1e   : > { %s543_s9 = sshra.s32 %s174_s5, 4  ;;  %s544_s9 = int_to_ptr.hbm [resolvable:$true] %s543_s9 }
  0x1f   : > { %s545_s10 = scalar_lea.hbm %s544_s9, 1  ;;  %p551_p3 = scmp.lt.s32.totalorder %s544_s9, %s956_s1 }
  0x20   : > { %p546_p13 = scmp.ne.s32.totalorder %s544_s9, %s545_s10  ;;  %p552_p4 = scmp.lt.s32.totalorder %s550_s19, %s545_s10 }
  0x22   : > { %p548_p1 = pnand %p547_p0, %p546_p13  ;;  %p553_p5 = por %p552_p4, %p551_p3 }
  0x24   : > { %p549_p2 = pneg %p548_p1 }
  0x26   : > { %p554_p7 = pnand %p553_p5, %p549_p2 }
  0x28   : > { %557 = shalt.err (!%p554_p7)
}
  0x29   : > { %493 = dma.hbm_to_vmem [thread:$0]  (!%p787_p12), %s174_s5, 16, %s176_s7, %s798_s8  }
  0x2a   : > { %p473_p8 = scmp.ge.s32.totalorder %s703_s15, 1  ;;  %p197_p9 = scmp.lt.s32.totalorder %s703_s15, 4 }
  0x2b   : > { %s472_s30 = sshll.u32 %s703_s15, 3  ;;  %s958_s0 = sld [smem:[#allocation13_spill]] }
  0x2c   : > { %p816_p13 = pnand %p473_p8, %p197_p9  ;;  %s148_s10 = scalar_lea.vmem [#allocation2], %s477_s27 }
  0x2d   : > { %s155_s11 = sshll.u32 %s148_s10, 4  ;;  %s145_s19 = scalar_lea.sflag [#allocation3], %s785_s25  ;;  %s156_s11 = int_to_ptr.vmem [resolvable:$true] %s155_s11 }
  0x31   : > { %s152_s9 = scalar_lea.hbm %s958_s0, %s472_s30  ;;  %s580_s1 = scalar_lea.hbm %s958_s0, 168 }
  0x32   : > { %s153_s17 = sshll.u32 %s152_s9, 4  ;;  %s154_s17 = int_to_ptr.hbm [resolvable:$true] %s153_s17 }
  0x33   : > { %s573_s20 = sshra.s32 %s154_s17, 4  ;;  %s574_s20 = int_to_ptr.hbm [resolvable:$true] %s573_s20 }
  0x34   : > { %s575_s5 = scalar_lea.hbm %s574_s20, 56  ;;  %p581_p4 = scmp.lt.s32.totalorder %s574_s20, %s958_s0 }
  0x35   : > { %p576_p1 = scmp.ne.s32.totalorder %s574_s20, %s575_s5  ;;  %p582_p5 = scmp.lt.s32.totalorder %s580_s1, %s575_s5 }
  0x37   : > { %p578_p2 = pnand %p576_p1, %p547_p0  ;;  %p583_p7 = por %p582_p5, %p581_p4 }
  0x39   : > { %p579_p3 = pneg %p578_p2 }
  0x3b   : > { %p584_p8 = pnand %p583_p7, %p579_p3 }
  0x3d   : > { %587 = shalt.err (!%p584_p8)
}
  0x3e   : > { %s705_s27 = smov 384   ;;  %s706_s6 = smov 128  }
  0x3f   : > { %s707_s9 = smov 8   ;;  %s188_s29 = scalar_lea.hbm %s947_s2, %s703_s15 }
  0x40   : > { %490 = dma.hbm_to_vmem [thread:$0]  (!%p787_p12), %s154_s17, 896, %s156_s11, %s145_s19, %s705_s27, %s706_s6, %s707_s9  }
  0x41   : > { %s190_s21 = sshll.u32 %s188_s29, 4  ;;  %s185_s4 = scalar_lea.vmem [#allocation7], %s785_s25  ;;  %s191_s21 = int_to_ptr.hbm [resolvable:$true] %s190_s21 }
  0x42   : > { %s192_s20 = sshll.u32 %s185_s4, 4  ;;  %s603_s1 = sshra.s32 %s191_s21, 4  ;;  %s193_s20 = int_to_ptr.vmem [resolvable:$true] %s192_s20  ;;  %s604_s1 = int_to_ptr.hbm [resolvable:$true] %s603_s1 }
  0x43   : > { %s605_s5 = scalar_lea.hbm %s604_s1, 1  ;;  %s610_s11 = scalar_lea.hbm %s947_s2, 3 }
  0x44   : > { %p606_p9 = scmp.ne.s32.totalorder %s604_s1, %s605_s5  ;;  %p611_p3 = scmp.lt.s32.totalorder %s604_s1, %s947_s2 }
  0x45   : > { %p612_p4 = scmp.lt.s32.totalorder %s610_s11, %s605_s5 }
  0x46   : > { %p608_p1 = pnand %p606_p9, %p547_p0 }
  0x47   : > { %p613_p5 = por %p612_p4, %p611_p3 }
  0x48   : > { %p609_p2 = pneg %p608_p1 }
  0x4a   : > { %p614_p7 = pnand %p613_p5, %p609_p2 }
  0x4c   : > { %617 = shalt.err (!%p614_p7)
}
  0x4d   : > { %496 = dma.hbm_to_vmem [thread:$0]  (!%p787_p12), %s191_s21, 16, %s193_s20, %s798_s8  }
  0x4e   : > { %201 = sbr.rel (%p816_p13) target bundleno = 161 (0xa1), region = 32  ;;  %s856_s25 = sand.u32 (!%p816_p13), 1, %s695_s13  }
  0x4f   : > { %s478_s0 = smul.u32 (!%p816_p13), 56, %s856_s25  ;;  %s204_s27 = scalar_lea.sflag (!%p816_p13), [#allocation3], %s856_s25 }
  0x51   : > { %s207_s6 = scalar_lea.vmem (!%p816_p13), [#allocation2], %s478_s0 }
  0x53   : > { %678 = dma.done.wait (%p770_p6), %s204_s27, 896  }
  0x54   : > { %680 = vsyncadd (%p770_p6), %s204_s27, 4294966400  ;;  %s213_s21 = sand.u32 1, %s752_s16   ;;  %s216_s8 = scalar_lea.vmem [#allocation5], %s856_s25 }
  0x55   : > { %s214_s26 = scalar_lea.sflag [#allocation6], %s213_s21 }
  0x56   : > { %682 = dma.done.wait (%p770_p6), %s214_s26, 32  }
  0x57   : > { %684 = vsyncadd (%p770_p6), %s214_s26, 4294967264  ;;  %v872_v0 = vld [vmem:[%s207_s6] sm:$0xff]  ;;  %v874_v1 = vld [vmem:[%s207_s6 + $0x8] sm:$0xff]  ;;  %vm269_vm0 = vcmask 1040384   ;;  %s225_s22 = scalar_lea.vmem [#allocation7], %s856_s25  ;;  %s474_s28 = sshll.u32 %s752_s16, 3 }
  0x58   : > { %v876_v2 = vld [vmem:[%s207_s6 + $0x10] sm:$0xff]  ;;  %v878_v3 = vld [vmem:[%s207_s6 + $0x18] sm:$0xff]  ;;  %v264_v4 = vadd.f32 %v874_v1, %v872_v0  ;;  %v279_v5 = vmul.f32 %v872_v0, %v872_v0  ;;  %v280_v6 = vmul.f32 %v874_v1, %v874_v1  ;;  %v888_v8 = vld [vmem:[%s207_s6 + $0x20] sm:$0xff]  ;;  %s357_s7 = scalar_lea.hbm %s948_s3, %s474_s28  ;;  %s256_s29 = scalar_lea.vmem [#allocation8], %s478_s0 }
  0x59   : > { %v281_v7 = vmul.f32 %v876_v2, %v876_v2  ;;  %v890_v9 = vld [vmem:[%s207_s6 + $0x30] sm:$0x1]  ;;  %v282_v11 = vmul.f32 %v878_v3, %v878_v3  ;;  %v262_v13 = vld [vmem:[%s207_s6 + $0x28] sm:$0xff]  ;;  %v283_v15 = vmul.f32 %v888_v8, %v888_v8  ;;  %s358_s4 = sshll.u32 %s256_s29, 4  ;;  %s360_s16 = sshll.u32 %s357_s7, 4  ;;  %s359_s4 = int_to_ptr.vmem [resolvable:$true] %s358_s4  ;;  %s361_s16 = int_to_ptr.hbm [resolvable:$true] %s360_s16 }
  0x5a   : > { %v265_v10 = vadd.f32 %v264_v4, %v876_v2  ;;  %v286_v12 = vadd.f32 %v280_v6, %v279_v5  ;;  %v285_v17 = vmul.f32 %v890_v9, %v890_v9  ;;  %v284_v19 = vmul.f32 %v262_v13, %v262_v13  ;;  %v314_v52 = vld [vmem:[%s216_s8] sm:$0x1]  ;;  %s347_s20 = scalar_lea.sflag [#allocation4], %s856_s25  ;;  %s647_s1 = sshra.s32 %s361_s16, 4  ;;  %s648_s1 = int_to_ptr.hbm [resolvable:$true] %s647_s1 }
  0x5b   : > { %v270_v21 = vsel %vm269_vm0, %v890_v9, 0.0  ;;  %v316_v55 = vld [vmem:[%s225_s22] sm:$0x1]  ;;  %s649_s5 = scalar_lea.hbm %s648_s1, 56  ;;  %s653_s17 = scalar_lea.hbm %s948_s3, 168 }
  0x5c   : > { %v266_v14 = vadd.f32 %v265_v10, %v878_v3  ;;  %v287_v16 = vadd.f32 %v286_v12, %v281_v7  ;;  %v291_v24 = vsel %vm269_vm0, %v285_v17, 0.0  ;;  %p650_p6 = scmp.ne.s32.totalorder %s648_s1, %s649_s5  ;;  %p654_p13 = scmp.lt.s32.totalorder %s648_s1, %s948_s3 }
  0x5d   : > { %p655_p8 = scmp.lt.s32.totalorder %s653_s17, %s649_s5 }
  0x5e   : > { %v267_v18 = vadd.f32 %v266_v14, %v888_v8  ;;  %v288_v20 = vadd.f32 %v287_v16, %v282_v11  ;;  %p651_p12 = pnand %p650_p6, %p776_p10 }
  0x5f   : > { %p656_p9 = por %p655_p8, %p654_p13 }
  0x60   : > { %v268_v22 = vadd.f32 %v267_v18, %v262_v13  ;;  %v289_v23 = vadd.f32 %v288_v20, %v283_v15  ;;  %p652_p0 = pneg %p651_p12 }
  0x62   : > { %v271_v25 = vadd.f32 %v270_v21, %v268_v22  ;;  %v290_v26 = vadd.f32 %v289_v23, %v284_v19  ;;  %p657_p1 = pnand %p656_p9, %p652_p0 }
  0x64   : > { %v272_v27 = vrot.slane %v271_v25, 4  ;;  %v292_v28 = vadd.f32 %v291_v24, %v290_v26 }
  0x66   : > { %v273_v29 = vadd.f32 %v272_v27, %v271_v25  ;;  %v293_v30 = vrot.slane %v292_v28, 4 }
  0x68   : > { %v274_v31 = vrot.slane %v273_v29, 2  ;;  %v294_v32 = vadd.f32 %v293_v30, %v292_v28 }
  0x6a   : > { %v275_v33 = vadd.f32 %v274_v31, %v273_v29  ;;  %v295_v34 = vrot.slane %v294_v32, 2 }
  0x6c   : > { %v276_v35 = vrot.slane %v275_v33, 1  ;;  %v296_v36 = vadd.f32 %v295_v34, %v294_v32 }
  0x6e   : > { %v277_v37 = vadd.f32 %v276_v35, %v275_v33  ;;  %v297_v38 = vrot.slane %v296_v36, 1 }
  0x70   : > { %v278_v39 = vmul.f32 0.020408163, %v277_v37  ;;  %v298_v40 = vadd.f32 %v297_v38, %v296_v36 }
  0x72   : > { %v299_v41 = vmul.f32 0.020408163, %v298_v40  ;;  %v300_v42 = vmul.f32 %v278_v39, %v278_v39 }
  0x74   : > { %v301_v43 = vsub.f32 %v299_v41, %v300_v42 }
  0x76   : > { %v302_v44 = vmax.f32 %v301_v43, 0.0 }
  0x78   : > { %v303_v45 = vadd.f32 0.001, %v302_v44 }
  0x7a   : > { %541 = vrsqrt.f32 %v303_v45  ;;  %vm310_vm1 = vweird.f32 %v303_v45 }
  0x80   : > { %v542_v46 = vpop.eup %541 }
  0x81   : > { %v305_v47 = vmul.f32 %v542_v46, %v303_v45  ;;  %vm311_vm2 = vweird.f32 %v542_v46 }
  0x82   : > { %vm312_vm3 = vmor %vm310_vm1, %vm311_vm2 }
  0x83   : > { %v306_v48 = vmul.f32 %v542_v46, %v305_v47 }
  0x85   : > { %v307_v49 = vmul.f32 0.5, %v306_v48 }
  0x87   : > { %v308_v50 = vsub.f32 1.5, %v307_v49 }
  0x89   : > { %v309_v51 = vmul.f32 %v542_v46, %v308_v50 }
  0x8b   : > { %v313_v53 = vsel %vm312_vm3, %v542_v46, %v309_v51 }
  0x8c   : > { %v315_v54 = vmul.f32 %v314_v52, %v313_v53 }
  0x8e   : > { %v317_v56 = vmul.f32 %v315_v54, %v278_v39  ;;  %v320_v57 = vperm.slane %v315_v54, 0 }
  0x90   : > { %v318_v58 = vsub.f32 %v316_v55, %v317_v56  ;;  %v322_v59 = vmul.f32 %v320_v57, %v872_v0  ;;  %v323_v60 = vmul.f32 %v320_v57, %v874_v1  ;;  %v324_v61 = vmul.f32 %v320_v57, %v876_v2 }
  0x91   : > { %v325_v62 = vmul.f32 %v320_v57, %v878_v3  ;;  %v326_v4 = vmul.f32 %v320_v57, %v888_v8  ;;  %v327_v5 = vmul.f32 %v320_v57, %v262_v13  ;;  %v328_v11 = vmul.f32 %v320_v57, %v890_v9 }
  0x92   : > { %v330_v63 = vperm.slane %v318_v58, 0 }
  0x94   : > { %v332_v6 = vadd.f32 %v330_v63, %v322_v59  ;;  %v333_v7 = vadd.f32 %v330_v63, %v323_v60  ;;  %v334_v10 = vadd.f32 %v330_v63, %v324_v61  ;;  %v335_v0 = vadd.f32 %v330_v63, %v325_v62 }
  0x95   : > { %v336_v1 = vadd.f32 %v330_v63, %v326_v4  ;;  %v337_v2 = vadd.f32 %v330_v63, %v327_v5  ;;  %v338_v3 = vadd.f32 %v330_v63, %v328_v11 }
  0x96   : > { %339 = vst [vmem:[%s256_s29] sm:$0xff] %v332_v6 }
  0x97   : > { %340 = vst [vmem:[%s256_s29 + $0x8] sm:$0xff] %v333_v7 }
  0x98   : > { %341 = vst [vmem:[%s256_s29 + $0x10] sm:$0xff] %v334_v10 }
  0x99   : > { %342 = vst [vmem:[%s256_s29 + $0x18] sm:$0xff] %v335_v0 }
  0x9a   : > { %343 = vst [vmem:[%s256_s29 + $0x20] sm:$0xff] %v336_v1 }
  0x9b   : > { %344 = vst [vmem:[%s256_s29 + $0x28] sm:$0xff] %v337_v2 }
  0x9c   : > { %345 = vst [vmem:[%s256_s29 + $0x30] sm:$0x1] %v338_v3 }
  0x9d   : > { %660 = shalt.err (!%p657_p1)
}
  0x9e   : > { %s708_s25 = smov 128   ;;  %s709_s27 = smov 384  }
  0x9f   : > { %s710_s6 = smov 8  }
  0xa0   : > { %485 = dma.vmem_to_hbm [thread:$0]  (%p776_p10), %s359_s4, 896, %s361_s16, %s347_s20, %s708_s25, %s709_s27, %s710_s6  }
  0xa1 PF: > { %p502_p2 = scmp.ge.s32.totalorder %s703_s15, 2  ;;  %s375_s21 = sand.u32 1, %s691_s12  }
  0xa2   : > { %s376_s26 = scalar_lea.sflag [#allocation4], %s375_s21 }
  0xa3   : > { %p498_p3 = pnand %p502_p2, %p780_p11 }
  0xa5   : > { %p499_p4 = pneg %p498_p3 }
  0xa7   : > { %686 = dma.done.wait (%p499_p4), %s376_s26, 896  }
  0xa8   : > { %688 = vsyncadd (%p499_p4), %s376_s26, 4294966400  ;;  %s959_s8 = sld [smem:[#allocation12_spill]]  ;;  %p19_p5 = scmp.ge.s32.totalorder %s756_s18, 5  }
  0xa9   : > { %s960_s12 = smov %s695_s13  ;;  %s961_s13 = smov %s699_s14 }
  0xaa   : > { %s963_s15 = smov %s756_s18  ;;  %21 = sbr.rel (!%p19_p5) target bundleno = 10 (0xa), region = 101 }
  0xae   : > { %s962_s14 = smov %s959_s8 }
  0xaf   :  { %382 = vsyncpa [#allocation3], 1 }
  0xb0   :  { %384 = vsyncpa [#allocation3 + $0x1], 1 }
  0xb1   :  { %385 = vsyncpa [#allocation6], 1 }
  0xb2   :  { %387 = vsyncpa [#allocation6 + $0x1], 1 }
  0xb3   :  { %388 = vsyncpa [#allocation4], 1 }
  0xb4   :  { %390 = vsyncpa [#allocation4 + $0x1], 1 }

</bundles_post_ra>
